<compile_context>
chip_gen: v7x
topology: tpu7x:2x2x1
jax: 0.10.0
libtpu: 0.0.40
codegen_flags: <defaults>
</compile_context>

<pallas_src>
import functools

import jax
import jax.numpy as jnp
import numpy as np
from jax import lax
from jax.experimental import pallas as pl
from jax.experimental.pallas import tpu as pltpu

LANE = 128
VMEM_LIMIT_BYTES = 32 * 1024 * 1024   # explicit scoped-VMEM limit (safe on v5e/v6e/v7x)


def _round_up(x, m):
    return ((x + m - 1) // m) * m


# ----------------------------------------------------------------------------
# Kernel 1: one GCNConv_dgl layer.
#   k-loop (reduction, last grid axis, "arbitrary"):  acc += adj_tile @ x_tile
#   epilogue (k == last):  h = acc @ Wt + rowsum(adj) * b ; activation ; [normalize]
# This is the reassociation  adj @ (x @ Wt + b) == (adj @ x) @ Wt + rowsum(adj) * b,
# exact in real arithmetic; rowsum is precomputed in f32 from the unquantized adj.
# ----------------------------------------------------------------------------
def _gcn_layer_kernel(x_ref, wt_ref, b_ref, rs_ref, adj_ref, out_ref, acc_ref, *,
                      activation, normalize):
    k = pl.program_id(1)

    @pl.when(k == 0)
    def _():
        acc_ref[...] = jnp.zeros_like(acc_ref)

    # bf16 operands straight from HBM (no in-kernel casts), f32 accumulation.
    acc_ref[...] += jnp.dot(adj_ref[...], x_ref[...],
                            preferred_element_type=jnp.float32)

    @pl.when(k == pl.num_programs(1) - 1)
    def _():
        # Linear + bias applied once per output tile (hoisted out of the k loop).
        h = jnp.dot(acc_ref[...].astype(jnp.bfloat16), wt_ref[...],
                    preferred_element_type=jnp.float32)
        h = h + rs_ref[...] * b_ref[...]          # rowsum(adj)[:,None] * bias
        if activation == "relu":
            h = jnp.maximum(h, 0.0)
        elif activation == "tanh":
            h = jnp.tanh(h)
        if normalize:
            # F.normalize(dim=1, p=2): x * rsqrt(max(||x||^2, 1e-24))
            inv = lax.rsqrt(jnp.maximum(jnp.sum(h * h, axis=-1, keepdims=True), 1e-24))
            h = h * inv
        out_ref[...] = h.astype(out_ref.dtype)


def gcn_layer(x, wt, b, rowsum, adj, *, activation, normalize, out_dtype,
              block_m=512, block_k=512):
    N, Dp = x.shape
    block_m = min(block_m, N)
    block_k = min(block_k, N)
    assert N % block_m == 0 and N % block_k == 0, "N must be divisible by the row/k tiles"
    grid = (N // block_m, N // block_k)
    kernel = functools.partial(_gcn_layer_kernel, activation=activation,
                               normalize=normalize)
    flops = 2 * N * N * Dp + 2 * N * Dp * Dp
    bytes_accessed = int(
        N * N * adj.dtype.itemsize            # adj stream (bf16)
        + N * Dp * x.dtype.itemsize           # x stream (bf16)
        + N * Dp * jnp.dtype(out_dtype).itemsize
        + Dp * Dp * wt.dtype.itemsize
        + (N + Dp) * 4)                       # rowsum + bias
    return pl.pallas_call(
        kernel,
        out_shape=jax.ShapeDtypeStruct((N, Dp), out_dtype),
        grid_spec=pltpu.PrefetchScalarGridSpec(
            num_scalar_prefetch=0,
            grid=grid,
            in_specs=[
                pl.BlockSpec((block_k, Dp), lambda i, k: (k, 0)),       # x rows for k-tile (bf16)
                pl.BlockSpec((Dp, Dp), lambda i, k: (0, 0)),            # Wt (resident, bf16)
                pl.BlockSpec((1, Dp), lambda i, k: (0, 0)),             # bias (resident, f32)
                pl.BlockSpec((block_m, 1), lambda i, k: (i, 0)),        # rowsum(adj) per row tile
                pl.BlockSpec((block_m, block_k), lambda i, k: (i, k)),  # adj tile (bf16)
            ],
            out_specs=pl.BlockSpec((block_m, Dp), lambda i, k: (i, 0)),
            scratch_shapes=[pltpu.VMEM((block_m, Dp), jnp.float32)],
        ),
        compiler_params=pltpu.CompilerParams(
            dimension_semantics=("parallel", "arbitrary"),
            vmem_limit_bytes=VMEM_LIMIT_BYTES),
        cost_estimate=pl.CostEstimate(
            flops=flops,
            transcendentals=N * Dp if activation == "tanh" else 0,
            bytes_accessed=bytes_accessed),
    )(x, wt, b, rowsum, adj)


# ----------------------------------------------------------------------------
# Kernel 2: similarity matrix -> per-row top-(k+1) mask -> relu, tiled over query rows.
# hn (already L2-normalized, f32) stays resident on the key side.
# ----------------------------------------------------------------------------
def _sim_topk_kernel(hq_ref, hall_ref, out_ref, *, topk):
    hq = hq_ref[...]                    # (TQ, Dp) f32, normalized
    hall = hall_ref[...]                # (N,  Dp) f32, normalized
    # f32 matmul on purpose: bf16 operands can reorder values near the per-row
    # threshold and change top-k membership vs. the torch reference.
    sims = lax.dot_general(hq, hall, (((1,), (1,)), ((), ())),
                           preferred_element_type=jnp.float32)   # (TQ, N)

    # per-row threshold = value of the `topk`-th largest entry; iterated
    # max-below-previous-threshold (topk is small and static).  Only `sims` and the
    # (TQ, 1) threshold stay live (no second (TQ, N) temporary).
    # TODO(synk): ties are kept by threshold comparison; torch.topk picks exactly
    # `topk` indices per row (identical for distinct float values).
    thresh = jnp.full((sims.shape[0], 1), jnp.inf, dtype=jnp.float32)
    for _ in range(topk):
        thresh = jnp.max(jnp.where(sims < thresh, sims, -jnp.inf),
                         axis=-1, keepdims=True)

    # fused mask * sims -> relu: relu(sims * mask) == where(keep, max(sims,0), 0)
    out_ref[...] = jnp.where(sims >= thresh, jnp.maximum(sims, 0.0), 0.0).astype(out_ref.dtype)


def similarity_topk_relu(hn, topk, *, block_q=512):
    N, Dp = hn.shape
    block_q = min(block_q, N)
    assert N % block_q == 0, "N must be divisible by the query tile"
    kernel = functools.partial(_sim_topk_kernel, topk=topk)
    # TODO(synk): for very large N (v7x 64 MiB VMEM) the resident key matrix and the
    # (block_q, N) output block need a key-tiled streaming top-k; full-resident keys
    # are fine at the scales this wrapper asserts on.
    return pl.pallas_call(
        kernel,
        out_shape=jax.ShapeDtypeStruct((N, N), jnp.float32),
        grid_spec=pltpu.PrefetchScalarGridSpec(
            num_scalar_prefetch=0,
            grid=(N // block_q,),
            in_specs=[
                pl.BlockSpec((block_q, Dp), lambda i: (i, 0)),   # query rows
                pl.BlockSpec((N, Dp), lambda i: (0, 0)),         # all keys (resident)
            ],
            out_specs=pl.BlockSpec((block_q, N), lambda i: (i, 0)),
        ),
        compiler_params=pltpu.CompilerParams(
            dimension_semantics=("parallel",),
            vmem_limit_bytes=VMEM_LIMIT_BYTES),
        cost_estimate=pl.CostEstimate(
            flops=2 * N * N * Dp,
            transcendentals=0,
            bytes_accessed=4 * (2 * N * Dp + N * N)),
    )(hn, hn)


# ----------------------------------------------------------------------------
# GNN_learner wrapper (parameters initialized deterministically in-script)
# ----------------------------------------------------------------------------
class GNNLearnerPallas:
    def __init__(self, nlayers, isize, k, knn_metric, i, sparse, mlp_act, adj, *, key,
                 block_m=512, block_k=512, block_q=512):
        assert not sparse, "sparse=True (knn_fast + dgl.graph) path is not translated"
        self.nlayers = nlayers
        self.isize = isize
        self.k = k
        self.i = i                      # unused for non_linearity == 'relu'
        self.mlp_act = mlp_act
        self.block_m = block_m
        self.block_k = block_k
        self.block_q = block_q
        # lane-dense padded feature width (zero-padded columns stay exactly zero
        # through every layer, so normalization / similarities are unaffected).
        self.dp = _round_up(isize, LANE)

        adj_f32 = jnp.asarray(adj, jnp.float32)                     # dense (N, N) edge weights
        # rowsum(adj) in f32 (exact bias reassociation), adj stored bf16 for the kernels.
        self.rowsum = jnp.sum(adj_f32, axis=1, keepdims=True)       # (N, 1) f32
        self.adj = adj_f32.astype(jnp.bfloat16)

        # nn.Linear default init: U(-1/sqrt(fan_in), 1/sqrt(fan_in)).
        # (param_init() in the torch module sets an *unused* `weight` attribute,
        #  so the Linear weights keep their default init.)
        bound = 1.0 / np.sqrt(isize)
        self.wts, self.biases = [], []
        for _ in range(nlayers):
            key, wk, bk = jax.random.split(key, 3)
            w = jax.random.uniform(wk, (isize, isize), jnp.float32, -bound, bound)
            b = jax.random.uniform(bk, (isize,), jnp.float32, -bound, bound)
            wt = jnp.zeros((self.dp, self.dp), jnp.float32).at[:isize, :isize].set(w.T)
            bp = jnp.zeros((1, self.dp), jnp.float32).at[0, :isize].set(b)
            self.wts.append(wt.astype(jnp.bfloat16))     # pre-cast weights (static)
            self.biases.append(bp)                        # bias stays f32

    def __call__(self, features):
        N, D = features.shape
        assert D == self.isize
        assert N % LANE == 0, "node count must be a multiple of 128 (pad externally)"
        # zero-pad features to the lane-dense width; inter-layer h is carried in bf16.
        h = jnp.zeros((N, self.dp), jnp.float32).at[:, :D].set(
            jnp.asarray(features, jnp.float32)).astype(jnp.bfloat16)

        for li in range(self.nlayers):
            is_last = li == self.nlayers - 1
            act = "none" if is_last else self.mlp_act
            h = gcn_layer(h, self.wts[li], self.biases[li], self.rowsum, self.adj,
                          activation=act, normalize=is_last,
                          out_dtype=jnp.float32 if is_last else jnp.bfloat16,
                          block_m=self.block_m, block_k=self.block_k)
        return similarity_topk_relu(h, self.k + 1, block_q=self.block_q)


# ----------------------------------------------------------------------------
if __name__ == "__main__":
    key = jax.random.PRNGKey(0)

    N = 256       # number of nodes (multiple of 128)
    ISIZE = 64    # feature / hidden dim (isize); padded to 128 internally
    NLAYERS = 2
    K = 5

    key, kf, ka, kp = jax.random.split(key, 4)
    features = jax.random.normal(kf, (N, ISIZE), jnp.float32)

    # deterministic dense weighted adjacency (row-normalized random graph)
    a = jax.random.uniform(ka, (N, N), jnp.float32)
    adj = jnp.where(a > 0.9, a, 0.0)
    adj = adj + jnp.eye(N, dtype=jnp.float32)                     # self loops
    adj = adj / jnp.sum(adj, axis=1, keepdims=True)               # normalize rows

    model = GNNLearnerPallas(
        nlayers=NLAYERS, isize=ISIZE, k=K, knn_metric="cosine",
        i=6, sparse=False, mlp_act="relu", adj=adj, key=kp,
        block_m=128, block_k=128, block_q=128,   # small N -> multi-tile grids, 2 i-tiles for v7x
    )

    out = model(features)
    out = jax.block_until_ready(out)
    assert out.shape == (N, N)
    assert bool(jnp.all(jnp.isfinite(out)))
    print("KERNEL_OK")
</pallas_src>

<mosaic_0001>
module attributes {stable_mosaic.version = 11 : i64} {
  func.func @_gcn_layer_kernel(%arg0: i32, %arg1: i32, %arg2: memref<128x128xbf16, #tpu.memory_space<vmem>>, %arg3: memref<128x128xbf16, #tpu.memory_space<vmem>>, %arg4: memref<1x128xf32, #tpu.memory_space<vmem>>, %arg5: memref<128x1xf32, #tpu.memory_space<vmem>>, %arg6: memref<128x128xbf16, #tpu.memory_space<vmem>>, %arg7: memref<128x128xbf16, #tpu.memory_space<vmem>>, %arg8: memref<128x128xf32, #tpu.memory_space<vmem>>) attributes {dimension_semantics = [#tpu.dimension_semantics<parallel>, #tpu.dimension_semantics<arbitrary>], iteration_bounds = array<i64: 2, 2>, scalar_prefetch = 0 : i64, scratch_operands = 1 : i64, tpu.core_type = #tpu.core_type<tc>, window_params = [{transform_indices = @transform_0, window_bounds = array<i64: 128, 128>}, {pipeline_mode = #tpu.pipeline_mode<synchronous>, transform_indices = @transform_1, window_bounds = array<i64: 128, 128>}, {pipeline_mode = #tpu.pipeline_mode<synchronous>, transform_indices = @transform_2, window_bounds = array<i64: 1, 128>}, {transform_indices = @transform_3, window_bounds = array<i64: 128, 1>}, {transform_indices = @transform_4, window_bounds = array<i64: 128, 128>}, {transform_indices = @transform_5, window_bounds = array<i64: 128, 128>}]} {
    %c0_i32 = arith.constant 0 : i32
    %0 = arith.cmpi eq, %arg1, %c0_i32 : i32
    %1 = arith.extui %0 : i1 to i32
    %c0_i32_0 = arith.constant 0 : i32
    %2 = arith.cmpi ne, %1, %c0_i32_0 : i32
    scf.if %2 {
      %cst_9 = arith.constant 0.000000e+00 : f32
      %12 = vector.broadcast %cst_9 : f32 to vector<128x128xf32>
      %c0_10 = arith.constant 0 : index
      %c0_11 = arith.constant 0 : index
      %13 = vector.load %arg8[%c0_10, %c0_11] : memref<128x128xf32, #tpu.memory_space<vmem>>, vector<128x128xf32>
      tpu.vector_store %arg8[%c0_10, %c0_11], %12 {strides = array<i32>} : memref<128x128xf32, #tpu.memory_space<vmem>>, vector<128x128xf32>,
    } else {
    }
    %c0 = arith.constant 0 : index
    %c0_1 = arith.constant 0 : index
    %3 = vector.load %arg8[%c0, %c0_1] : memref<128x128xf32, #tpu.memory_space<vmem>>, vector<128x128xf32>
    %c0_2 = arith.constant 0 : index
    %c0_3 = arith.constant 0 : index
    %4 = vector.load %arg6[%c0_2, %c0_3] : memref<128x128xbf16, #tpu.memory_space<vmem>>, vector<128x128xbf16>
    %c0_4 = arith.constant 0 : index
    %c0_5 = arith.constant 0 : index
    %5 = vector.load %arg2[%c0_4, %c0_5] : memref<128x128xbf16, #tpu.memory_space<vmem>>, vector<128x128xbf16>
    %cst = arith.constant dense<0.000000e+00> : vector<128x128xf32>
    %6 = tpu.matmul %4, %5, %cst {dimension_numbers = #tpu.dot_dimension_numbers<[1], [0], [0], [1], [0, 0, 1, 1], [], []>} : vector<128x128xbf16>, vector<128x128xbf16>, vector<128x128xf32> -> vector<128x128xf32>
    %7 = arith.addf %3, %6 : vector<128x128xf32>
    %c0_6 = arith.constant 0 : index
    %c0_7 = arith.constant 0 : index
    %8 = vector.load %arg8[%c0_6, %c0_7] : memref<128x128xf32, #tpu.memory_space<vmem>>, vector<128x128xf32>
    tpu.vector_store %arg8[%c0_6, %c0_7], %7 {strides = array<i32>} : memref<128x128xf32, #tpu.memory_space<vmem>>, vector<128x128xf32>,
    %c1_i32 = arith.constant 1 : i32
    %9 = arith.cmpi eq, %arg1, %c1_i32 : i32
    %10 = arith.extui %9 : i1 to i32
    %c0_i32_8 = arith.constant 0 : i32
    %11 = arith.cmpi ne, %10, %c0_i32_8 : i32
    scf.if %11 {
      %c0_9 = arith.constant 0 : index
      %c0_10 = arith.constant 0 : index
      %12 = vector.load %arg8[%c0_9, %c0_10] : memref<128x128xf32, #tpu.memory_space<vmem>>, vector<128x128xf32>
      %13 = arith.truncf %12 : vector<128x128xf32> to vector<128x128xbf16>
      %c0_11 = arith.constant 0 : index
      %c0_12 = arith.constant 0 : index
      %14 = vector.load %arg3[%c0_11, %c0_12] : memref<128x128xbf16, #tpu.memory_space<vmem>>, vector<128x128xbf16>
      %cst_13 = arith.constant dense<0.000000e+00> : vector<128x128xf32>
      %15 = tpu.matmul %13, %14, %cst_13 {dimension_numbers = #tpu.dot_dimension_numbers<[1], [0], [0], [1], [0, 0, 1, 1], [], []>} : vector<128x128xbf16>, vector<128x128xbf16>, vector<128x128xf32> -> vector<128x128xf32>
      %c0_14 = arith.constant 0 : index
      %c0_15 = arith.constant 0 : index
      %16 = vector.load %arg5[%c0_14, %c0_15] : memref<128x1xf32, #tpu.memory_space<vmem>>, vector<128x1xf32>
      %c0_16 = arith.constant 0 : index
      %c0_17 = arith.constant 0 : index
      %17 = vector.load %arg4[%c0_16, %c0_17] : memref<1x128xf32, #tpu.memory_space<vmem>>, vector<1x128xf32>
      %18 = vector.broadcast %16 : vector<128x1xf32> to vector<128x128xf32>
      %19 = vector.broadcast %17 : vector<1x128xf32> to vector<128x128xf32>
      %20 = arith.mulf %18, %19 : vector<128x128xf32>
      %21 = arith.addf %15, %20 : vector<128x128xf32>
      %cst_18 = arith.constant 0.000000e+00 : f32
      %22 = vector.broadcast %cst_18 : f32 to vector<128x128xf32>
      %23 = arith.maximumf %21, %22 : vector<128x128xf32>
      %24 = arith.truncf %23 : vector<128x128xf32> to vector<128x128xbf16>
      %c0_19 = arith.constant 0 : index
      %c0_20 = arith.constant 0 : index
      %25 = vector.load %arg7[%c0_19, %c0_20] : memref<128x128xbf16, #tpu.memory_space<vmem>>, vector<128x128xbf16>
      tpu.vector_store %arg7[%c0_19, %c0_20], %24 {strides = array<i32>} : memref<128x128xbf16, #tpu.memory_space<vmem>>, vector<128x128xbf16>,
    } else {
    }
    return
  }
  func.func @transform_0(%arg0: i32, %arg1: i32) -> (i32, i32) {
    %c0_i32 = arith.constant 0 : i32
    %c0_i32_0 = arith.constant 0 : i32
    return %arg1, %c0_i32 : i32, i32
  }
  func.func @transform_1(%arg0: i32, %arg1: i32) -> (i32, i32) {
    %c0_i32 = arith.constant 0 : i32
    %c0_i32_0 = arith.constant 0 : i32
    %c0_i32_1 = arith.constant 0 : i32
    return %c0_i32, %c0_i32_0 : i32, i32
  }
  func.func @transform_2(%arg0: i32, %arg1: i32) -> (i32, i32) {
    %c0_i32 = arith.constant 0 : i32
    %c0_i32_0 = arith.constant 0 : i32
    %c0_i32_1 = arith.constant 0 : i32
    return %c0_i32, %c0_i32_0 : i32, i32
  }
  func.func @transform_3(%arg0: i32, %arg1: i32) -> (i32, i32) {
    %c0_i32 = arith.constant 0 : i32
    %c0_i32_0 = arith.constant 0 : i32
    return %arg0, %c0_i32 : i32, i32
  }
  func.func @transform_4(%arg0: i32, %arg1: i32) -> (i32, i32) {
    %c0_i32 = arith.constant 0 : i32
    return %arg0, %arg1 : i32, i32
  }
  func.func @transform_5(%arg0: i32, %arg1: i32) -> (i32, i32) {
    %c0_i32 = arith.constant 0 : i32
    %c0_i32_0 = arith.constant 0 : i32
    return %arg0, %c0_i32 : i32, i32
  }
}

</mosaic_0001>

<bundles_post_ra>
// kernel: tpu_custom_call.1
= control target key start
LH: loop header
LB: loop body
LE: loop exit
PB: predicated region body
PF: predicated region fallthrough
CT: control target
= control target key end

     0   :  { %s2299_s0 = inlined_call_operand.hbm [shape: bf16[256,128], index: 0, kind: input, shape index: {}]   ;;  %s2300_s1 = inlined_call_operand.hbm [shape: bf16[128,128], index: 1, kind: input, shape index: {}]   ;;  %s2301_s2 = inlined_call_operand.vmem [shape: f32[1,128], index: 2, kind: input, shape index: {}]   ;;  %s2302_s3 = inlined_call_operand.vmem [shape: f32[256,1], index: 3, kind: input, shape index: {}]   ;;  %s2303_s4 = inlined_call_operand.vmem [shape: bf16[256,256], index: 4, kind: input, shape index: {}]   ;;  %s2304_s5 = inlined_call_operand.hbm [shape: bf16[256,128], index: 5, kind: output, shape index: {}]  }
   0x1   :  { %2320 = sst [smem:[#allocation22_spill]] %s2299_s0 }
   0x2   :  { %2321 = sst [smem:[#allocation23_spill]] %s2301_s2 }
   0x3   :  { %2322 = sst [smem:[#allocation24_spill]] %s2304_s5 }
   0x4   :  { %10 = vsyncpa [#allocation4], 0 }
   0x5   :  { %12 = vsyncpa [#allocation4 + $0x1], 0 }
   0x6   :  { %13 = vsyncpa [#allocation7], 0 }
   0x7   :  { %14 = vsyncpa [#allocation5], 0 }
   0x8   :  { %16 = vsyncpa [#allocation5 + $0x1], 0  ;;  %s1919_s18 = smov 0   ;;  %s1921_s19 = smov 0  }
   0x9   :  { %s1923_s20 = smov 0   ;;  %s1925_s21 = smov 0  }
   0xa   :  { %s1927_s22 = smov 0   ;;  %s1929_s23 = smov 0  }
   0xb   :  { %s1931_s24 = smov 0   ;;  %s1933_s25 = smov 0  }
   0xc   :  { %s1935_s26 = smov 0   ;;  %s1937_s27 = smov 0  }
   0xd   :  { %s1939_s28 = smov 0   ;;  %s1941_s29 = smov 0  }
   0xe   :  { %s1943_s30 = smov 0  }
   0xf LB: > { %2323 = sst [smem:[#allocation13_spill]] %s1828_s18  ;;  %s2305_s6 = sadd.s32 4294967295, %s1876_s30   ;;  %s1876_s30 = sphi %s1943_s30, %s22_s30   ;;  %s1872_s29 = sphi %s1941_s29, %s2372_s29   ;;  %s1868_s28 = sphi %s1939_s28, %s2371_s28   ;;  %s1864_s27 = sphi %s1937_s27, %s2370_s27   ;;  %s1860_s26 = sphi %s1935_s26, %s2369_s26   ;;  %s1856_s25 = sphi %s1933_s25, %s2368_s25   ;;  %s1852_s24 = sphi %s1931_s24, %s2367_s24   ;;  %s1848_s23 = sphi %s1929_s23, %s2366_s23   ;;  %s1844_s22 = sphi %s1927_s22, %s2365_s22   ;;  %s1840_s21 = sphi %s1925_s21, %s2364_s21   ;;  %s1836_s20 = sphi %s1923_s20, %s2357_s20   ;;  %s1832_s19 = sphi %s1921_s19, %s2363_s19   ;;  %s1828_s18 = sphi %s1919_s18, %s2362_s18  }
  0x10   : > { %2324 = sst [smem:[#allocation14_spill]] %s1836_s20  ;;  %s31_s8 = sadd.s32 1, %s1868_s28 }
  0x11   : > { %s34_s9 = sadd.s32 1, %s1872_s29  ;;  %p32_p0 = scmp.ge.s32.totalorder %s31_s8, 2 }
  0x12   : > { %s41_s10 = sadd.s32 1, %s1856_s25  ;;  %p48_p1 = scmp.ne.s32.totalorder %s1856_s25, %s1852_s24 }
  0x13   : > { %p49_p2 = scmp.eq.s32.totalorder %s1876_s30, 0  ;;  %s2374_s8 = smov (%p32_p0, %s31_s8), 0 }
  0x14   : > { %2325 = sst [smem:[#allocation15_spill]] %s2374_s8  ;;  %s2376_s9 = smov (!%p32_p0, %s34_s9), %s1872_s29 }
  0x15   : > { %s38_s11 = ssub.s32 %s1868_s28, %s2374_s8  ;;  %p1997_p3 = por %p49_p2, %p48_p1 }
  0x16   : > { %p36_p4 = scmp.ge.s32.totalorder %s2376_s9, 2  ;;  %p39_p5 = scmp.eq.s32.totalorder %s38_s11, 0 }
  0x17   : > { %s2326_s12 = scalar_select %p1997_p3, 1, 0 }
  0x18   : > { %p54_p6 = scmp.ne.s32.totalorder %s1852_s24, %s1848_s23  ;;  %p2004_p7 = scmp.eq.s32.totalorder %s2305_s6, 0 }
  0x19   : > { %s2378_s9 = smov (%p36_p4, %s2376_s9), 0  ;;  %s137_s23 = sadd.s32 1, %s1844_s22 }
  0x1a   : > { %s2327_s13 = scalar_select %p2004_p7, 1, 0 }
  0x1b   : > { %2328 = sst [smem:[#allocation16_spill]] %s2378_s9  ;;  %p2015_p8 = por %p2004_p7, %p54_p6 }
  0x1c   : > { %s2011_s14 = scalar_select %p39_p5, %s1856_s25, %s41_s10  }
  0x1d   : > { %s2330_s15 = scalar_select %p2015_p8, 1, 0 }
  0x1e   : > { %2329 = sst [smem:[#allocation17_spill]] %s2011_s14  ;;  %s132_s16 = ssub.s32 %s1872_s29, %s2378_s9 }
  0x1f   : > { %s134_s17 = sor.u32 %s132_s16, %s38_s11  ;;  %p144_p10 = scmp.ne.s32.totalorder %s1844_s22, %s1840_s21 }
  0x20   : > { %p135_p9 = scmp.eq.s32.totalorder %s134_s17, 0  ;;  %p161_p11 = scmp.eq.s32.totalorder %s132_s16, 0 }
  0x21   : > { %s163_s7 = sadd.s32 1, %s1836_s20  ;;  %p2030_p12 = por %p144_p10, %p49_p2 }
  0x22   : > { %s2026_s6 = scalar_select %p135_p9, %s1844_s22, %s137_s23  }
  0x23   : > { %s2332_s10 = scalar_select %p2030_p12, 1, 0 }
  0x24   : > { %2331 = sst [smem:[#allocation18_spill]] %s2026_s6  ;;  %p173_p13 = scmp.ne.s32.totalorder %s1836_s20, %s1832_s19 }
  0x25   : > { %s2037_s8 = scalar_select %p161_p11, %s1836_s20, %s163_s7  }
  0x26   : > { %s2334_s14 = sadd.s32 4294967295, %s1876_s30   ;;  %p179_p1 = scmp.ne.s32.totalorder %s1832_s19, %s1828_s18 }
  0x27   : > { %2333 = sst [smem:[#allocation19_spill]] %s2037_s8  ;;  %p174_p0 = scmp.eq.s32.totalorder %s2334_s14, 3 }
  0x28   : > { %s2335_s11 = sadd.s32 4294967294, %s1876_s30   ;;  %p1261_p5 = scmp.ge.s32.totalorder %s1876_s30, 1 }
  0x29   : > { %p180_p4 = scmp.eq.s32.totalorder %s2335_s11, 3  ;;  %p2046_p6 = por %p174_p0, %p173_p13 }
  0x2a   : > { %p187_p9 = scmp.lt.s32.totalorder %s1876_s30, 5  ;;  %s1878_s7 = smov [#allocation6]  }
  0x2b   : > { %s2336_s16 = scalar_select %p2046_p6, 1, 0 }
  0x2c   : > { %p2051_p8 = por %p180_p4, %p179_p1  ;;  %p2055_p2 = pnand %p1261_p5, %p187_p9 }
  0x2d   : > { %2337 = sst [smem:[#allocation20_spill]] %s2336_s16  ;;  %s199_s14 = sshll.u32 %s1878_s7, 4  ;;  %s200_s14 = int_to_ptr.vmem [resolvable:$true] %s199_s14 }
  0x2e   : > { %s2338_s17 = scalar_select %p2051_p8, 1, 0 }
  0x2f   : > { %s2340_s23 = scalar_select %p2055_p2, 1, 0 }
  0x30   : > { %2339 = sst [smem:[#allocation21_spill]] %s2338_s17  ;;  %p1528_p10 = pneg %p2055_p2 }
  0x31   : > { %s1678_s8 = scalar_lea.hbm %s2300_s1, 1024 }
  0x32   : > { %p2063_p11 = pnand %p1528_p10, %p2004_p7  ;;  %p1679_p13 = scmp.ne.s32.totalorder %s2300_s1, %s1678_s8 }
  0x33   : > { %p1685_p5 = scmp.lt.u32.totalorder %s1678_s8, %s2300_s1 }
  0x34   : > { %p1680_p0 = pneg %p2063_p11 }
  0x36   : > { %p1681_p1 = pnand %p1680_p0, %p1679_p13 }
  0x38   : > { %p1682_p4 = pneg %p1681_p1 }
  0x3a   : > { %p1687_p9 = pnand %p1685_p5, %p1682_p4 }
  0x3c   : > { %1690 = shalt.err (!%p1687_p9)
}
  0x3d   : > { %s1691_s5 = scalar_lea.vmem %s200_s14, 1024  ;;  %p1699_p7 = scmp.lt.s32.totalorder %s200_s14, %s200_s14 }
  0x3e   : > { %p1692_p10 = scmp.ne.s32.totalorder %s200_s14, %s1691_s5  ;;  %p1700_p2 = scmp.lt.s32.totalorder %s1691_s5, %s1691_s5 }
  0x40   : > { %p1694_p8 = pnand %p1692_p10, %p1680_p0  ;;  %p1701_p12 = por %p1700_p2, %p1699_p7 }
  0x42   : > { %p1695_p6 = pneg %p1694_p8 }
  0x44   : > { %p1702_p3 = pnand %p1701_p12, %p1695_p6 }
  0x46   : > { %1705 = shalt.err (!%p1702_p3)
}
  0x47   : > { %s1879_s20 = smov 64   ;;  %s1880_s6 = smov 4  }
  0x48   : > { %1531 = dma.hbm_to_vmem [thread:$0]  (!%p2063_p11), %s2300_s1, 1024, %s200_s14, [#allocation7], %s1879_s20, %s1879_s20, %s1880_s6  }
  0x49   : > { %p1263_p13 = scmp.ge.s32.totalorder %s1876_s30, 4 }
  0x4a   : > { %s216_s18 = sand.u32 (!%p1263_p13), 1, %s1856_s25   ;;  %s1326_s8 = sshll.u32 (!%p1263_p13), %s1868_s28, 10 }
  0x4b   : > { %212 = sbr.rel (%p1263_p13) target bundleno = 122 (0x7a), region = 24  ;;  %s1264_s5 = sshll.u32 (!%p1263_p13), %s216_s18, 6 }
  0x4c   : > { %s2342_s0 = sld [smem:[#allocation22_spill]] (!%p1263_p13)  ;;  %s220_s11 = scalar_lea.vmem (!%p1263_p13), [#allocation3], %s1264_s5 }
  0x4d   : > { %s227_s14 = sshll.u32 (!%p1263_p13), %s220_s11, 4  ;;  %s2093_s20 = scalar_lea.sflag (!%p1263_p13), [#allocation4], %s216_s18  ;;  %s2091_s14 = int_to_ptr.vmem [resolvable:$true] %s227_s14 }
  0x4e   : > { %p2343_p7 = scmp.ne.s32.totalorder (!%p1263_p13), %s2326_s12, 0 }
  0x52   : > { %s2089_s2 = scalar_lea.hbm %s2342_s0, %s1326_s8  ;;  %s1710_s16 = scalar_lea.hbm %s2342_s0, 2048 }
  0x53   : > { %s1706_s6 = scalar_lea.hbm %s2089_s2, 1024  ;;  %p1711_p6 = scmp.lt.u32.totalorder %s2089_s2, %s2342_s0 }
  0x54   : > { %p1707_p3 = scmp.ne.s32.totalorder %s2089_s2, %s1706_s6  ;;  %p1712_p2 = scmp.lt.u32.totalorder %s1710_s16, %s1706_s6 }
  0x55   : > { %p1714_p0 = scmp.lt.u32.totalorder %s1706_s6, %s2089_s2 }
  0x56   : > { %p1708_p8 = pnand %p1707_p3, %p2343_p7  ;;  %p1713_p11 = por %p1712_p2, %p1711_p6 }
  0x58   : > { %p1709_p12 = pneg %p1708_p8  ;;  %p1715_p1 = por %p1714_p0, %p1713_p11 }
  0x5a   : > { %p1716_p4 = pnand %p1715_p1, %p1709_p12 }
  0x5c   : > { %1719 = shalt.err (!%p1716_p4)
}
  0x5d   : > { %s1720_s18 = scalar_lea.vmem %s2091_s14, 1024  ;;  %s1881_s5 = smov [#allocation3]  }
  0x5e   : > { %p1721_p5 = scmp.ne.s32.totalorder %s2091_s14, %s1720_s18  ;;  %s1724_s11 = sshll.u32 %s1881_s5, 4  ;;  %s1725_s11 = int_to_ptr.vmem [resolvable:$false] %s1724_s11 }
  0x5f   : > { %s1726_s9 = scalar_lea.vmem %s1725_s11, 2048  ;;  %p1727_p13 = scmp.lt.s32.totalorder %s2091_s14, %s1725_s11 }
  0x60   : > { %p1722_p9 = pnand %p1721_p5, %p2343_p7  ;;  %p1728_p3 = scmp.lt.s32.totalorder %s1726_s9, %s1720_s18 }
  0x62   : > { %p1723_p10 = pneg %p1722_p9  ;;  %p1729_p8 = por %p1728_p3, %p1727_p13 }
  0x64   : > { %p1730_p6 = pnand %p1729_p8, %p1723_p10 }
  0x66   : > { %1733 = shalt.err (!%p1730_p6)
}
  0x67   : > { %s1882_s6 = smov 64   ;;  %s1883_s17 = smov 4  }
  0x68   : > { %1522 = dma.hbm_to_vmem [thread:$0]  (%p2343_p7), %s2089_s2, 1024, %s2091_s14, %s2093_s20, %s1882_s6, %s1882_s6, %s1883_s17  }
  0x69   : > { %p2344_p12 = scmp.ne.s32.totalorder %s2332_s10, 0 }
  0x6a   : > { %s247_s16 = sand.u32 (%p2344_p12), 1, %s1844_s22   ;;  %s1327_s8 = sshll.u32 (%p2344_p12), %s1872_s29, 5 }
  0x6b   : > { %245 = sbr.rel (!%p2344_p12) target bundleno = 122 (0x7a), region = 36  ;;  %s1267_s7 = sshll.u32 (%p2344_p12), %s247_s16, 6 }
  0x6c   : > { %s252_s18 = sadd.s32 (%p2344_p12), %s1868_s28, %s1327_s8  ;;  %s249_s2 = scalar_lea.vmem (%p2344_p12), [#allocation8], %s1267_s7 }
  0x6d   : > { %s1270_s5 = sshll.u32 (%p2344_p12), %s252_s18, 2 }
  0x6e   : > { %s2125_s0 = scalar_lea.vmem (%p2344_p12), %s2303_s4, %s1270_s5 }
  0x6f   : > { %v270_v0 = vld [vmem:[%s2125_s0] sm:$0xf] (%p2344_p12)  ;;  %v272_v1 = vld [vmem:[%s2125_s0 + $0x8] sm:$0xf] (%p2344_p12)  ;;  %v274_v2 = vld [vmem:[%s2125_s0 + $0x10] sm:$0xf] (%p2344_p12) }
  0x70   : > { %271 = vst [vmem:[%s249_s2] sm:$0xf] (%p2344_p12), %v270_v0  ;;  %273 = vst [vmem:[%s249_s2 + $0x4] sm:$0xf] (%p2344_p12), %v272_v1  ;;  %v276_v3 = vld [vmem:[%s2125_s0 + $0x18] sm:$0xf] (%p2344_p12) }
  0x71   : > { %275 = vst [vmem:[%s249_s2 + $0x8] sm:$0xf] (%p2344_p12), %v274_v2  ;;  %v278_v4 = vld [vmem:[%s2125_s0 + $0x20] sm:$0xf] (%p2344_p12)  ;;  %v280_v5 = vld [vmem:[%s2125_s0 + $0x28] sm:$0xf] (%p2344_p12) }
  0x72   : > { %277 = vst [vmem:[%s249_s2 + $0xc] sm:$0xf] %v276_v3  ;;  %279 = vst [vmem:[%s249_s2 + $0x10] sm:$0xf] %v278_v4  ;;  %v282_v6 = vld [vmem:[%s2125_s0 + $0x30] sm:$0xf] }
  0x73   : > { %281 = vst [vmem:[%s249_s2 + $0x14] sm:$0xf] %v280_v5  ;;  %v284_v7 = vld [vmem:[%s2125_s0 + $0x38] sm:$0xf]  ;;  %v286_v8 = vld [vmem:[%s2125_s0 + $0x40] sm:$0xf] }
  0x74   : > { %283 = vst [vmem:[%s249_s2 + $0x18] sm:$0xf] %v282_v6  ;;  %285 = vst [vmem:[%s249_s2 + $0x1c] sm:$0xf] %v284_v7  ;;  %v288_v9 = vld [vmem:[%s2125_s0 + $0x48] sm:$0xf] }
  0x75   : > { %287 = vst [vmem:[%s249_s2 + $0x20] sm:$0xf] %v286_v8  ;;  %v290_v10 = vld [vmem:[%s2125_s0 + $0x50] sm:$0xf]  ;;  %v292_v11 = vld [vmem:[%s2125_s0 + $0x58] sm:$0xf] }
  0x76   : > { %289 = vst [vmem:[%s249_s2 + $0x24] sm:$0xf] %v288_v9  ;;  %291 = vst [vmem:[%s249_s2 + $0x28] sm:$0xf] %v290_v10  ;;  %v294_v12 = vld [vmem:[%s2125_s0 + $0x60] sm:$0xf] }
  0x77   : > { %293 = vst [vmem:[%s249_s2 + $0x2c] sm:$0xf] %v292_v11  ;;  %v296_v13 = vld [vmem:[%s2125_s0 + $0x68] sm:$0xf]  ;;  %v298_v14 = vld [vmem:[%s2125_s0 + $0x70] sm:$0xf] }
  0x78   : > { %295 = vst [vmem:[%s249_s2 + $0x30] sm:$0xf] %v294_v12  ;;  %297 = vst [vmem:[%s249_s2 + $0x34] sm:$0xf] %v296_v13  ;;  %v300_v15 = vld [vmem:[%s2125_s0 + $0x78] sm:$0xf] }
  0x79   : > { %299 = vst [vmem:[%s249_s2 + $0x38] sm:$0xf] %v298_v14  ;;  %301 = vst [vmem:[%s249_s2 + $0x3c] sm:$0xf] %v300_v15 }
  0x7a PF: > { %p2345_p7 = scmp.ne.s32.totalorder %s2340_s23, 0 }
  0x7b   : > { %s361_s12 = sand.u32 (!%p2345_p7), 1, %s1852_s24   ;;  %p2346_p2 = scmp.ne.s32.totalorder (!%p2345_p7), %s2330_s15, 0 }
  0x7c   : > { %359 = sbr.rel (%p2345_p7) target bundleno = 669 (0x29d), region = 77  ;;  %s1272_s10 = sshll.u32 (!%p2345_p7), %s361_s12, 6 }
  0x7d   : > { %s362_s14 = scalar_lea.sflag (!%p2345_p7), [#allocation4], %s361_s12  ;;  %s2146_s20 = scalar_lea.vmem (!%p2345_p7), [#allocation3], %s1272_s10 }
  0x83   : > { %1815 = dma.done.wait (%p2346_p2), %s362_s14, 1024  }
  0x84   : > { %1817 = vsyncadd (%p2346_p2), %s362_s14, 4294966272  ;;  %p2347_p11 = scmp.ne.s32.totalorder %s2327_s13, 0 }
  0x86   : > { %1819 = dma.done.wait (%p2347_p11), [#allocation7], 1024  }
  0x87   : > { %1821 = vsyncadd (%p2347_p11), [#allocation7], 4294966272  ;;  %s375_s0 = sand.u32 1, %s1840_s21   ;;  %s409_s23 = sand.u32 1, %s1832_s19  }
  0x88   : > { %s1274_s6 = sshll.u32 %s375_s0, 6  ;;  %s1275_s17 = sshll.u32 %s409_s23, 6 }
  0x89   : > { %s1276_s16 = sshll.u32 %s1864_s27, 4  ;;  %s2166_s13 = scalar_lea.vmem [#allocation8], %s1274_s6 }
  0x8a   : > { %p414_p0 = scmp.lt.s32.totalorder %s1276_s16, 31  ;;  %s2168_s5 = scalar_lea.vmem [#allocation9], %s1275_s17 }
  0x8b   : > { %p1278_p1 = scmp.ne.s32.totalorder %s1860_s26, 0 }
  0x8c   : > { %s2380_s16 = smov (!%p414_p0, %s1276_s16), 31  ;;  %v1884_v16 = vmov (!%p1278_p1), 0.0  }
  0x8d   : > { %s1277_s15 = sshll.u32 %s2380_s16, 3  ;;  %425 = sbr.rel (%p1278_p1) target bundleno = 149 (0x95), region = 93  ;;  %426 = vst [vmem:[#allocation2] sm:$0xff] (!%p1278_p1), %v1884_v16  ;;  %427 = vst [vmem:[#allocation2 + $0x8] sm:$0xff] (!%p1278_p1), %v1884_v16 }
  0x8e   : > { %s2164_s18 = scalar_lea.vmem %s2302_s3, %s1277_s15  ;;  %428 = vst [vmem:[#allocation2 + $0x10] sm:$0xff] (!%p1278_p1), %v1884_v16  ;;  %429 = vst [vmem:[#allocation2 + $0x18] sm:$0xff] (!%p1278_p1), %v1884_v16 }
  0x8f   : > { %430 = vst [vmem:[#allocation2 + $0x20] sm:$0xff] (!%p1278_p1), %v1884_v16  ;;  %431 = vst [vmem:[#allocation2 + $0x28] sm:$0xff] (!%p1278_p1), %v1884_v16 }
  0x90   : > { %432 = vst [vmem:[#allocation2 + $0x30] sm:$0xff] (!%p1278_p1), %v1884_v16  ;;  %433 = vst [vmem:[#allocation2 + $0x38] sm:$0xff] (!%p1278_p1), %v1884_v16 }
  0x91   : > { %434 = vst [vmem:[#allocation2 + $0x40] sm:$0xff] (!%p1278_p1), %v1884_v16  ;;  %435 = vst [vmem:[#allocation2 + $0x48] sm:$0xff] (!%p1278_p1), %v1884_v16 }
  0x92   : > { %436 = vst [vmem:[#allocation2 + $0x50] sm:$0xff] (!%p1278_p1), %v1884_v16  ;;  %437 = vst [vmem:[#allocation2 + $0x58] sm:$0xff] (!%p1278_p1), %v1884_v16 }
  0x93   : > { %438 = vst [vmem:[#allocation2 + $0x60] sm:$0xff] (!%p1278_p1), %v1884_v16  ;;  %439 = vst [vmem:[#allocation2 + $0x68] sm:$0xff] (!%p1278_p1), %v1884_v16 }
  0x94   : > { %440 = vst [vmem:[#allocation2 + $0x70] sm:$0xff] %v1884_v16  ;;  %441 = vst [vmem:[#allocation2 + $0x78] sm:$0xff] %v1884_v16 }
  0x95 PF: > { %v1652_v17 = vld [vmem:[%s2146_s20] sm:$0xff]   ;;  %v1653_v18 = vld [vmem:[%s2146_s20 + $0x8] sm:$0xff]   ;;  %v1654_v19 = vld [vmem:[%s2146_s20 + $0x10] sm:$0xff]   ;;  %p1295_p4 = scmp.ne.s32.totalorder %s1860_s26, 1 }
  0x96   : > { %1424 = vmatprep.subr.bf16.mxu0 %v1652_v17  ;;  %1488 = vmatprep.subr.bf16.mxu1 %v1652_v17  ;;  %v1655_v20 = vld [vmem:[%s2146_s20 + $0x18] sm:$0xff]   ;;  %v1660_v21 = vld [vmem:[%s2166_s13] sm:$0xff]   ;;  %v1657_v24 = vld [vmem:[%s2146_s20 + $0x28] sm:$0xff]   ;;  %s2348_s11 = sld [smem:[#allocation23_spill]] (!%p1295_p4) }
  0x97   : > { %1425 = vmatpush3.bf16.msra.mxu0 %v1652_v17  ;;  %1496 = vmatpush3.bf16.msra.mxu1 %v1652_v17  ;;  %v1661_v22 = vld [vmem:[%s2166_s13 + $0x20] sm:$0xff]   ;;  %v1658_v25 = vld [vmem:[%s2146_s20 + $0x30] sm:$0xff]   ;;  %v1659_v26 = vld [vmem:[%s2146_s20 + $0x38] sm:$0xff]  }
  0x98   : > { %1426 = vmatprep.subr.bf16.mxu0 %v1653_v18  ;;  %1489 = vmatprep.subr.bf16.mxu1 %v1653_v18  ;;  %v1656_v23 = vld [vmem:[%s2146_s20 + $0x20] sm:$0xff]   ;;  %v1662_v27 = vld [vmem:[%s2166_s13 + $0x8] sm:$0xff]   ;;  %v1664_v29 = vld [vmem:[%s2166_s13 + $0x10] sm:$0xff]  }
  0x99   : > { %1440 = vmatprep.mubr.bf16.mxu0 %v1660_v21  ;;  %1448 = vmatprep.mubr.bf16.mxu1 %v1661_v22  ;;  %v1663_v28 = vld [vmem:[%s2166_s13 + $0x28] sm:$0xff]   ;;  %v1665_v30 = vld [vmem:[%s2166_s13 + $0x30] sm:$0xff]   ;;  %v1666_v31 = vld [vmem:[%s2166_s13 + $0x18] sm:$0xff]  }
  0x9a   : > { %v1667_v32 = vld [vmem:[%s2166_s13 + $0x38] sm:$0xff]   ;;  %v444_v33 = vld [vmem:[#allocation2 + $0x10] sm:$0xff]  ;;  %v442_v35 = vld [vmem:[#allocation2] sm:$0xff] }
  0x9b   : > { %1427 = vmatpush3.bf16.msra.mxu0 %v1653_v18  ;;  %1497 = vmatpush3.bf16.msra.mxu1 %v1653_v18  ;;  %v452_v34 = vld [vmem:[#allocation2 + $0x50] sm:$0xff]  ;;  %v450_v36 = vld [vmem:[#allocation2 + $0x40] sm:$0xff]  ;;  %v445_v39 = vld [vmem:[#allocation2 + $0x18] sm:$0xff] }
  0x9c   : > { %1428 = vmatprep.subr.bf16.mxu0 %v1654_v19  ;;  %1490 = vmatprep.subr.bf16.mxu1 %v1654_v19  ;;  %v453_v40 = vld [vmem:[#allocation2 + $0x58] sm:$0xff]  ;;  %v443_v45 = vld [vmem:[#allocation2 + $0x8] sm:$0xff]  ;;  %v448_v57 = vld [vmem:[#allocation2 + $0x30] sm:$0xff] }
  0x9d   : > { %v451_v46 = vld [vmem:[#allocation2 + $0x48] sm:$0xff]  ;;  %v456_v58 = vld [vmem:[#allocation2 + $0x70] sm:$0xff]  ;;  %v446_v59 = vld [vmem:[#allocation2 + $0x20] sm:$0xff] }
  0x9e   : > { %v454_v60 = vld [vmem:[#allocation2 + $0x60] sm:$0xff]  ;;  %v449_v63 = vld [vmem:[#allocation2 + $0x38] sm:$0xff]  ;;  %v447_v5 = vld [vmem:[#allocation2 + $0x28] sm:$0xff] }
  0x9f   : > { %1429 = vmatpush3.bf16.msra.mxu0 %v1654_v19  ;;  %1498 = vmatpush3.bf16.msra.mxu1 %v1654_v19  ;;  %v457_v0 = vld [vmem:[#allocation2 + $0x78] sm:$0xff]  ;;  %v455_v6 = vld [vmem:[#allocation2 + $0x68] sm:$0xff]  ;;  %v1670_v17 = vld [vmem:[#allocation6] sm:$0xff] (!%p1295_p4)   ;;  %v1885_v19 = vmov (!%p1295_p4), 0  }
  0xa0   : > { %1430 = vmatprep.subr.bf16.mxu0 %v1655_v20  ;;  %1491 = vmatprep.subr.bf16.mxu1 %v1655_v20  ;;  %v1671_v18 = vld [vmem:[#allocation6 + $0x8] sm:$0xff] (!%p1295_p4)   ;;  %v1673_v21 = vld [vmem:[#allocation6 + $0x18] sm:$0xff] (!%p1295_p4)  }
  0xa1   : > { %1669 = vset.pattern.permute.xlu1 (!%p1295_p4), %v1885_v19  ;;  %1668 = vset.pattern.permute.xlu0 (!%p1295_p4), %v1885_v19 }
  0xa3   : > { %1431 = vmatpush3.bf16.msra.mxu0 %v1655_v20  ;;  %1499 = vmatpush3.bf16.msra.mxu1 %v1655_v20  ;;  %v1672_v20 = vld [vmem:[#allocation6 + $0x10] sm:$0xff] (!%p1295_p4)  }
  0xa4   : > { %1432 = vmatprep.subr.bf16.mxu0 %v1656_v23  ;;  %1492 = vmatprep.subr.bf16.mxu1 %v1656_v23 }
  0xa7   : > { %1433 = vmatpush3.bf16.msra.mxu0 %v1656_v23  ;;  %1500 = vmatpush3.bf16.msra.mxu1 %v1656_v23 }
  0xa8   : > { %1434 = vmatprep.subr.bf16.mxu0 %v1657_v24  ;;  %1493 = vmatprep.subr.bf16.mxu1 %v1657_v24 }
  0xab   : > { %1435 = vmatpush3.bf16.msra.mxu0 %v1657_v24  ;;  %1501 = vmatpush3.bf16.msra.mxu1 %v1657_v24 }
  0xac   : > { %1436 = vmatprep.subr.bf16.mxu0 %v1658_v25  ;;  %1494 = vmatprep.subr.bf16.mxu1 %v1658_v25 }
  0xaf   : > { %1437 = vmatpush3.bf16.msra.mxu0 %v1658_v25  ;;  %1502 = vmatpush3.bf16.msra.mxu1 %v1658_v25 }
  0xb0   : > { %1438 = vmatprep.subr.bf16.mxu0 %v1659_v26  ;;  %1495 = vmatprep.subr.bf16.mxu1 %v1659_v26 }
  0xb3   : > { %1439 = vmatpush3.bf16.msra.mxu0 %v1659_v26  ;;  %1503 = vmatpush3.bf16.msra.mxu1 %v1659_v26 }
  0xb4   : > { %1456 = vmatprep.subr.bf16.mxu0 (!%p1295_p4), %v1670_v17  ;;  %1504 = vmatprep.subr.bf16.mxu1 (!%p1295_p4), %v1670_v17 }
  0xb6   : > { %1441 = vmatmul.mubr.bf16.vlgmr.msra.gmra.mrb[0].mxu0 %v1662_v27  ;;  %1449 = vmatmul.mubr.bf16.vlgmr.msra.gmra.mrb[0].mxu1 %v1663_v28  ;;  %v1674_v28 = vld [vmem:[#allocation6 + $0x20] sm:$0xff] (!%p1295_p4)  }
  0xb7   : > { %1444 = vmatprep.mubr.bf16.mxu0 %v1664_v29  ;;  %1452 = vmatprep.mubr.bf16.mxu1 %v1665_v30  ;;  %v761_v29 = vld [vmem:[%s2164_s18 + $0x10] sm:$0xff] (!%p1295_p4)  ;;  %v759_v30 = vld [vmem:[%s2164_s18] sm:$0xff] (!%p1295_p4) }
  0xb8   : > { %1457 = vmatpush3.bf16.msra.mxu0 (!%p1295_p4), %v1670_v17  ;;  %1512 = vmatpush3.bf16.msra.mxu1 (!%p1295_p4), %v1670_v17 }
  0xb9   : > { %1458 = vmatprep.subr.bf16.mxu0 (!%p1295_p4), %v1671_v18  ;;  %1505 = vmatprep.subr.bf16.mxu1 (!%p1295_p4), %v1671_v18 }
  0xba   : > { %788 = vperm.xlu1 (!%p1295_p4), %1669, %v761_v29   ;;  %778 = vperm.xlu0 (!%p1295_p4), %1668, %v759_v30  }
  0xbc   : > { %1459 = vmatpush3.bf16.msra.mxu0 (!%p1295_p4), %v1671_v18  ;;  %1513 = vmatpush3.bf16.msra.mxu1 (!%p1295_p4), %v1671_v18 }
  0xbd   : > { %1460 = vmatprep.subr.bf16.mxu0 (!%p1295_p4), %v1672_v20  ;;  %1506 = vmatprep.subr.bf16.mxu1 (!%p1295_p4), %v1672_v20 }
  0xbe   : > { %1445 = vmatmul.mubr.bf16.gmra.mrb[4].mxu0 %v1666_v31  ;;  %1453 = vmatmul.mubr.bf16.gmra.mrb[4].mxu1 %v1667_v32  ;;  %v762_v31 = vld [vmem:[%s2164_s18 + $0x18] sm:$0xff] (!%p1295_p4)  ;;  %v760_v32 = vld [vmem:[%s2164_s18 + $0x8] sm:$0xff] (!%p1295_p4) }
  0xbf   : > { %793 = vperm.xlu1 (!%p1295_p4), %1669, %v762_v31   ;;  %783 = vperm.xlu0 (!%p1295_p4), %1668, %v760_v32  }
  0xc0   : > { %1461 = vmatpush3.bf16.msra.mxu0 (!%p1295_p4), %v1672_v20  ;;  %1514 = vmatpush3.bf16.msra.mxu1 (!%p1295_p4), %v1672_v20 }
  0xc1   : > { %1462 = vmatprep.subr.bf16.mxu0 (!%p1295_p4), %v1673_v21  ;;  %1507 = vmatprep.subr.bf16.mxu1 (!%p1295_p4), %v1673_v21 }
  0xc4   : > { %1463 = vmatpush3.bf16.msra.mxu0 (!%p1295_p4), %v1673_v21  ;;  %1515 = vmatpush3.bf16.msra.mxu1 (!%p1295_p4), %v1673_v21 }
  0xc5   : > { %1464 = vmatprep.subr.bf16.mxu0 (!%p1295_p4), %v1674_v28  ;;  %1508 = vmatprep.subr.bf16.mxu1 (!%p1295_p4), %v1674_v28 }
  0xc8   : > { %1465 = vmatpush3.bf16.msra.mxu0 (!%p1295_p4), %v1674_v28  ;;  %1516 = vmatpush3.bf16.msra.mxu1 (!%p1295_p4), %v1674_v28 }
 0x189   : > { %v1442_v37 = vpop.f32.mrb[0].mxu0  ;;  %v1450_v38 = vpop.f32.mrb[0].mxu1 }
 0x18a   : > { %v685_v41 = vadd.f32 %v1442_v37, %v444_v33  ;;  %v693_v42 = vadd.f32 %v1450_v38, %v452_v34  ;;  %v620_v43 = vpop.f32.mrb[1].mxu0  ;;  %v652_v44 = vpop.f32.mrb[1].mxu1  ;;  %v1675_v33 = vld [vmem:[#allocation6 + $0x28] sm:$0xff] (!%p1295_p4)   ;;  %v766_v37 = vld [vmem:[%s2164_s18 + $0x38] sm:$0xff] (!%p1295_p4)  ;;  %v765_v38 = vld [vmem:[%s2164_s18 + $0x30] sm:$0xff] (!%p1295_p4) }
 0x18b   : > { %v683_v47 = vadd.f32 %v620_v43, %v442_v35  ;;  %v691_v48 = vadd.f32 %v652_v44, %v450_v36  ;;  %v1443_v49 = vpop.f32.mrb[2].mxu0  ;;  %v1451_v50 = vpop.f32.mrb[2].mxu1  ;;  %v764_v34 = vld [vmem:[%s2164_s18 + $0x28] sm:$0xff] (!%p1295_p4)  ;;  %v763_v35 = vld [vmem:[%s2164_s18 + $0x20] sm:$0xff] (!%p1295_p4)  ;;  %1466 = vmatprep.subr.bf16.mxu0 (!%p1295_p4), %v1675_v33  ;;  %1509 = vmatprep.subr.bf16.mxu1 (!%p1295_p4), %v1675_v33  ;;  %v1676_v36 = vld [vmem:[#allocation6 + $0x30] sm:$0xff] (!%p1295_p4)  }
 0x18c   : > { %701 = vst [vmem:[#allocation2 + $0x10] sm:$0xff] %v685_v41  ;;  %709 = vst [vmem:[#allocation2 + $0x50] sm:$0xff] %v693_v42  ;;  %v686_v51 = vadd.f32 %v1443_v49, %v445_v39  ;;  %v694_v52 = vadd.f32 %v1451_v50, %v453_v40  ;;  %v623_v53 = vpop.f32.mrb[3].mxu0  ;;  %v655_v54 = vpop.f32.mrb[3].mxu1  ;;  %803 = vperm.xlu1 (!%p1295_p4), %1669, %v764_v34   ;;  %798 = vperm.xlu0 (!%p1295_p4), %1668, %v763_v35   ;;  %v1677_v39 = vld [vmem:[#allocation6 + $0x38] sm:$0xff] (!%p1295_p4)  }
 0x18d   : > { %699 = vst [vmem:[#allocation2] sm:$0xff] %v683_v47  ;;  %707 = vst [vmem:[#allocation2 + $0x40] sm:$0xff] %v691_v48  ;;  %v684_v55 = vadd.f32 %v623_v53, %v443_v45  ;;  %v692_v56 = vadd.f32 %v655_v54, %v451_v46  ;;  %1467 = vmatpush3.bf16.msra.mxu0 (!%p1295_p4), %v1675_v33  ;;  %1517 = vmatpush3.bf16.msra.mxu1 (!%p1295_p4), %v1675_v33  ;;  %v768_v45 = vld [vmem:[%s2164_s18 + $0x48] sm:$0xff] (!%p1295_p4)  ;;  %v767_v46 = vld [vmem:[%s2164_s18 + $0x40] sm:$0xff] (!%p1295_p4) }
 0x18e   : > { %702 = vst [vmem:[#allocation2 + $0x18] sm:$0xff] %v686_v51  ;;  %710 = vst [vmem:[#allocation2 + $0x58] sm:$0xff] %v694_v52  ;;  %1468 = vmatprep.subr.bf16.mxu0 (!%p1295_p4), %v1676_v36  ;;  %1510 = vmatprep.subr.bf16.mxu1 (!%p1295_p4), %v1676_v36  ;;  %v770_v54 = vld [vmem:[%s2164_s18 + $0x58] sm:$0xff] (!%p1295_p4) }
 0x18f   : > { %700 = vst [vmem:[#allocation2 + $0x8] sm:$0xff] %v684_v55  ;;  %708 = vst [vmem:[#allocation2 + $0x48] sm:$0xff] %v692_v56  ;;  %v769_v55 = vld [vmem:[%s2164_s18 + $0x50] sm:$0xff] (!%p1295_p4) }
 0x190   : > { %813 = vperm.xlu1 (!%p1295_p4), %1669, %v766_v37   ;;  %808 = vperm.xlu0 (!%p1295_p4), %1668, %v765_v38  }
 0x191   : > { %v1446_v61 = vpop.f32.mrb[4].mxu0  ;;  %v1454_v62 = vpop.f32.mrb[4].mxu1  ;;  %718 = sbr.rel (%p1295_p4) target bundleno = 641 (0x281), region = 97  ;;  %1469 = vmatpush3.bf16.msra.mxu0 (!%p1295_p4), %v1676_v36  ;;  %1518 = vmatpush3.bf16.msra.mxu1 (!%p1295_p4), %v1676_v36 }
 0x192   : > { %v689_v1 = vadd.f32 %v1446_v61, %v448_v57  ;;  %v697_v2 = vadd.f32 %v1454_v62, %v456_v58  ;;  %v636_v3 = vpop.f32.mrb[5].mxu0  ;;  %v668_v4 = vpop.f32.mrb[5].mxu1  ;;  %1470 = vmatprep.subr.bf16.mxu0 (!%p1295_p4), %v1677_v39  ;;  %1511 = vmatprep.subr.bf16.mxu1 (!%p1295_p4), %v1677_v39  ;;  %v771_v61 = vld [vmem:[%s2164_s18 + $0x60] sm:$0xff] (!%p1295_p4) }
 0x193   : > { %v687_v7 = vadd.f32 %v636_v3, %v446_v59  ;;  %v695_v8 = vadd.f32 %v668_v4, %v454_v60  ;;  %v1447_v9 = vpop.f32.mrb[6].mxu0  ;;  %v1455_v10 = vpop.f32.mrb[6].mxu1  ;;  %v721_v40 = vld [vmem:[#allocation2 + $0x10] sm:$0xff] (!%p1295_p4)  ;;  %v772_v60 = vld [vmem:[%s2164_s18 + $0x68] sm:$0xff] (!%p1295_p4) }
 0x194   : > { %705 = vst [vmem:[#allocation2 + $0x30] sm:$0xff] %v689_v1  ;;  %713 = vst [vmem:[#allocation2 + $0x70] sm:$0xff] %v697_v2  ;;  %v690_v11 = vadd.f32 %v1447_v9, %v449_v63  ;;  %v698_v12 = vadd.f32 %v1455_v10, %v457_v0  ;;  %v639_v13 = vpop.f32.mrb[7].mxu0  ;;  %v671_v14 = vpop.f32.mrb[7].mxu1  ;;  %v719_v22 = vld [vmem:[#allocation2] sm:$0xff] (!%p1295_p4)  ;;  %v729_v42 = vld [vmem:[#allocation2 + $0x50] sm:$0xff] (!%p1295_p4)  ;;  %823 = vperm.xlu1 (!%p1295_p4), %1669, %v768_v45   ;;  %818 = vperm.xlu0 (!%p1295_p4), %1668, %v767_v46  }
 0x195   : > { %703 = vst [vmem:[#allocation2 + $0x20] sm:$0xff] %v687_v7  ;;  %711 = vst [vmem:[#allocation2 + $0x60] sm:$0xff] %v695_v8  ;;  %v688_v15 = vadd.f32 %v639_v13, %v447_v5  ;;  %v696_v16 = vadd.f32 %v671_v14, %v455_v6  ;;  %v727_v24 = vld [vmem:[#allocation2 + $0x40] sm:$0xff] (!%p1295_p4)  ;;  %v722_v41 = vld [vmem:[#allocation2 + $0x18] sm:$0xff] (!%p1295_p4)  ;;  %1471 = vmatpush3.bf16.msra.mxu0 (!%p1295_p4), %v1677_v39  ;;  %1519 = vmatpush3.bf16.msra.mxu1 (!%p1295_p4), %v1677_v39  ;;  %v779_v2 = vpop.permute.xlu0 (!%p1295_p4), %778  ;;  %v789_v3 = vpop.permute.xlu1 (!%p1295_p4), %788 }
 0x196   : > { %706 = vst [vmem:[#allocation2 + $0x38] sm:$0xff] %v690_v11  ;;  %714 = vst [vmem:[#allocation2 + $0x78] sm:$0xff] %v698_v12  ;;  %v720_v23 = vld [vmem:[#allocation2 + $0x8] sm:$0xff] (!%p1295_p4)  ;;  %v730_v43 = vld [vmem:[#allocation2 + $0x58] sm:$0xff] (!%p1295_p4)  ;;  %v736_v50 = vpack.c.bf16 (!%p1295_p4), %v722_v41, %v721_v40 }
 0x197   : > { %704 = vst [vmem:[#allocation2 + $0x28] sm:$0xff] %v688_v15  ;;  %712 = vst [vmem:[#allocation2 + $0x68] sm:$0xff] %v696_v16  ;;  %v735_v25 = vpack.c.bf16 (!%p1295_p4), %v720_v23, %v719_v22  ;;  %v728_v26 = vld [vmem:[#allocation2 + $0x48] sm:$0xff] (!%p1295_p4)  ;;  %v740_v51 = vpack.c.bf16 (!%p1295_p4), %v730_v43, %v729_v42  ;;  %v774_v0 = vld [vmem:[%s2164_s18 + $0x78] sm:$0xff] (!%p1295_p4) }
 0x198   : > { %v739_v27 = vpack.c.bf16 %v728_v26, %v727_v24  ;;  %833 = vperm.xlu1 %1669, %v770_v54   ;;  %828 = vperm.xlu0 %1668, %v769_v55   ;;  %v773_v1 = vld [vmem:[%s2164_s18 + $0x70] sm:$0xff]  ;;  %v1296_v14 = vld [vmem:[%s2348_s11] ss:$0 sm:$0xff] }
 0x199   : > { %1472 = vmatprep.mubr.bf16.mxu0 %v735_v25  ;;  %v784_v4 = vpop.permute.xlu0 %783  ;;  %v794_v5 = vpop.permute.xlu1 %793  ;;  %v864_v16 = vmul.f32 %v1296_v14, %v789_v3  ;;  %v862_v19 = vmul.f32 %v1296_v14, %v779_v2 }
 0x19a   : > { %1480 = vmatprep.mubr.bf16.mxu1 %v739_v27  ;;  %1473 = vmatmul.mubr.bf16.vlgmr.msra.gmra.mrb[0].mxu0 %v736_v50  ;;  %v865_v23 = vmul.f32 %v1296_v14, %v794_v5  ;;  %v863_v29 = vmul.f32 %v1296_v14, %v784_v4 }
 0x19b   : > { %1481 = vmatmul.mubr.bf16.vlgmr.msra.gmra.mrb[0].mxu1 %v740_v51  ;;  %v725_v56 = vld [vmem:[#allocation2 + $0x30] sm:$0xff] }
 0x19c   : > { %v723_v44 = vld [vmem:[#allocation2 + $0x20] sm:$0xff]  ;;  %v733_v58 = vld [vmem:[#allocation2 + $0x70] sm:$0xff]  ;;  %843 = vperm.xlu1 %1669, %v772_v60   ;;  %838 = vperm.xlu0 %1668, %v771_v61  }
 0x19d   : > { %v731_v48 = vld [vmem:[#allocation2 + $0x60] sm:$0xff]  ;;  %v726_v57 = vld [vmem:[#allocation2 + $0x38] sm:$0xff] }
 0x19e   : > { %v724_v47 = vld [vmem:[#allocation2 + $0x28] sm:$0xff]  ;;  %v734_v59 = vld [vmem:[#allocation2 + $0x78] sm:$0xff]  ;;  %v738_v62 = vpack.c.bf16 %v726_v57, %v725_v56 }
 0x19f   : > { %v732_v49 = vld [vmem:[#allocation2 + $0x68] sm:$0xff]  ;;  %v737_v52 = vpack.c.bf16 %v724_v47, %v723_v44  ;;  %v742_v63 = vpack.c.bf16 %v734_v59, %v733_v58 }
 0x1a0   : > { %v741_v53 = vpack.c.bf16 %v732_v49, %v731_v48  ;;  %853 = vperm.xlu1 %1669, %v774_v0   ;;  %848 = vperm.xlu0 %1668, %v773_v1  }
 0x1a1   : > { %1476 = vmatprep.mubr.bf16.mxu0 %v737_v52 }
 0x1a2   : > { %1484 = vmatprep.mubr.bf16.mxu1 %v741_v53  ;;  %1477 = vmatmul.mubr.bf16.gmra.mrb[4].mxu0 %v738_v62 }
 0x1a3   : > { %1485 = vmatmul.mubr.bf16.gmra.mrb[4].mxu1 %v742_v63 }
 0x20b   : > { %v799_v6 = vpop.permute.xlu0 %798  ;;  %v804_v7 = vpop.permute.xlu1 %803 }
 0x20c   : > { %v866_v55 = vmul.f32 %v1296_v14, %v799_v6  ;;  %v867_v3 = vmul.f32 %v1296_v14, %v804_v7 }
 0x20f   : > { %v809_v8 = vpop.permute.xlu0 %808  ;;  %v814_v9 = vpop.permute.xlu1 %813 }
 0x210   : > { %v868_v51 = vmul.f32 %v1296_v14, %v809_v8  ;;  %v869_v61 = vmul.f32 %v1296_v14, %v814_v9 }
 0x213   : > { %v819_v10 = vpop.permute.xlu0 %818  ;;  %v824_v11 = vpop.permute.xlu1 %823 }
 0x214   : > { %v870_v20 = vmul.f32 %v1296_v14, %v819_v10  ;;  %v871_v30 = vmul.f32 %v1296_v14, %v824_v11 }
 0x217   : > { %v829_v12 = vpop.permute.xlu0 %828  ;;  %v834_v13 = vpop.permute.xlu1 %833 }
 0x218   : > { %v872_v17 = vmul.f32 %v1296_v14, %v829_v12  ;;  %v873_v24 = vmul.f32 %v1296_v14, %v834_v13 }
 0x21b   : > { %v839_v15 = vpop.permute.xlu0 %838  ;;  %v844_v18 = vpop.permute.xlu1 %843 }
 0x21c   : > { %v874_v56 = vmul.f32 %v1296_v14, %v839_v15  ;;  %v875_v4 = vmul.f32 %v1296_v14, %v844_v18 }
 0x21f   : > { %v849_v39 = vpop.permute.xlu0 %848  ;;  %v854_v46 = vpop.permute.xlu1 %853 }
 0x220   : > { %v876_v52 = vmul.f32 %v1296_v14, %v849_v39  ;;  %v877_v62 = vmul.f32 %v1296_v14, %v854_v46 }
 0x26d   : > { %v1474_v21 = vpop.f32.mrb[0].mxu0 }
 0x26e   : > { %v1482_v22 = vpop.f32.mrb[0].mxu1  ;;  %v969_v25 = vadd.f32 %v1474_v21, %v864_v16  ;;  %v960_v27 = vpop.f32.mrb[1].mxu0 }
 0x26f   : > { %v1001_v26 = vadd.f32 %v1482_v22, %v872_v17  ;;  %v992_v28 = vpop.f32.mrb[1].mxu1  ;;  %v961_v31 = vadd.f32 %v960_v27, %v862_v19  ;;  %v1475_v33 = vpop.f32.mrb[2].mxu0 }
 0x270   : > { %v993_v32 = vadd.f32 %v992_v28, %v870_v20  ;;  %v1483_v34 = vpop.f32.mrb[2].mxu1  ;;  %v972_v35 = vadd.f32 %v1475_v33, %v865_v23  ;;  %v963_v37 = vpop.f32.mrb[3].mxu0  ;;  %v1025_v42 = vmax.f32 %v969_v25, 0.0 }
 0x271   : > { %v1004_v36 = vadd.f32 %v1483_v34, %v873_v24  ;;  %v995_v38 = vpop.f32.mrb[3].mxu1  ;;  %v964_v40 = vadd.f32 %v963_v37, %v863_v29  ;;  %v1033_v43 = vmax.f32 %v1001_v26, 0.0  ;;  %v1023_v47 = vmax.f32 %v961_v31, 0.0 }
 0x272   : > { %v996_v41 = vadd.f32 %v995_v38, %v871_v30  ;;  %v1026_v44 = vmax.f32 %v972_v35, 0.0  ;;  %v1031_v48 = vmax.f32 %v993_v32, 0.0 }
 0x273   : > { %v1034_v45 = vmax.f32 %v1004_v36, 0.0  ;;  %v1024_v49 = vmax.f32 %v964_v40, 0.0 }
 0x274   : > { %v1032_v50 = vmax.f32 %v996_v41, 0.0  ;;  %v1353_v53 = vpack.c.bf16 %v1026_v44, %v1025_v42 }
 0x275   : > { %v1373_v54 = vpack.c.bf16 %v1034_v45, %v1033_v43  ;;  %v1348_v57 = vpack.c.bf16 %v1024_v49, %v1023_v47  ;;  %v1478_v59 = vpop.f32.mrb[4].mxu0 }
 0x276   : > { %v1368_v58 = vpack.c.bf16 %v1032_v50, %v1031_v48  ;;  %v1486_v60 = vpop.f32.mrb[4].mxu1  ;;  %1385 = vst [vmem:[%s2168_s5 + $0x8] sm:$0xff] %v1353_v53   ;;  %v985_v63 = vadd.f32 %v1478_v59, %v868_v51  ;;  %v976_v1 = vpop.f32.mrb[5].mxu0 }
 0x277   : > { %1389 = vst [vmem:[%s2168_s5 + $0x28] sm:$0xff] %v1373_v54   ;;  %v1017_v0 = vadd.f32 %v1486_v60, %v876_v52  ;;  %v1008_v2 = vpop.f32.mrb[5].mxu1  ;;  %1349 = vst [vmem:[%s2168_s5] sm:$0xff] %v1348_v57   ;;  %v977_v5 = vadd.f32 %v976_v1, %v866_v55  ;;  %v1479_v8 = vpop.f32.mrb[6].mxu0 }
 0x278   : > { %1388 = vst [vmem:[%s2168_s5 + $0x20] sm:$0xff] %v1368_v58   ;;  %v1009_v6 = vadd.f32 %v1008_v2, %v874_v56  ;;  %v1487_v10 = vpop.f32.mrb[6].mxu1  ;;  %v988_v11 = vadd.f32 %v1479_v8, %v869_v61  ;;  %v979_v13 = vpop.f32.mrb[7].mxu0  ;;  %v1029_v17 = vmax.f32 %v985_v63, 0.0 }
 0x279   : > { %v1020_v12 = vadd.f32 %v1487_v10, %v877_v62  ;;  %v1011_v9 = vpop.f32.mrb[7].mxu1  ;;  %v980_v15 = vadd.f32 %v979_v13, %v867_v3  ;;  %v1037_v19 = vmax.f32 %v1017_v0, 0.0  ;;  %v1027_v18 = vmax.f32 %v977_v5, 0.0 }
 0x27a   : > { %v1012_v16 = vadd.f32 %v1011_v9, %v875_v4  ;;  %v1030_v7 = vmax.f32 %v988_v11, 0.0  ;;  %v1035_v20 = vmax.f32 %v1009_v6, 0.0 }
 0x27b   : > { %v1038_v14 = vmax.f32 %v1020_v12, 0.0  ;;  %v1028_v21 = vmax.f32 %v980_v15, 0.0 }
 0x27c   : > { %v1036_v22 = vmax.f32 %v1012_v16, 0.0  ;;  %v1363_v23 = vpack.c.bf16 %v1030_v7, %v1029_v17 }
 0x27d   : > { %v1383_v24 = vpack.c.bf16 %v1038_v14, %v1037_v19  ;;  %v1358_v25 = vpack.c.bf16 %v1028_v21, %v1027_v18 }
 0x27e   : > { %v1378_v26 = vpack.c.bf16 %v1036_v22, %v1035_v20  ;;  %1387 = vst [vmem:[%s2168_s5 + $0x18] sm:$0xff] %v1363_v23  }
 0x27f   : > { %1391 = vst [vmem:[%s2168_s5 + $0x38] sm:$0xff] %v1383_v24   ;;  %1386 = vst [vmem:[%s2168_s5 + $0x10] sm:$0xff] %v1358_v25  }
 0x280   : > { %1390 = vst [vmem:[%s2168_s5 + $0x30] sm:$0xff] %v1378_v26  }
 0x281 PF: > { %s2349_s9 = sld [smem:[#allocation20_spill]]  ;;  %s1344_s2 = sshll.u32 %s1864_s27, 10 }
 0x282   : > { %s2350_s14 = sld [smem:[#allocation24_spill]]  ;;  %s1133_s0 = sshll.u32 %s2168_s5, 4  ;;  %s2222_s0 = int_to_ptr.vmem [resolvable:$true] %s1133_s0 }
 0x283   : > { %s2226_s6 = scalar_lea.sflag [#allocation5], %s409_s23  ;;  %s1734_s17 = scalar_lea.vmem %s2222_s0, 1024 }
 0x284   : > { %p1735_p5 = scmp.ne.s32.totalorder %s2222_s0, %s1734_s17  ;;  %s1886_s27 = smov [#allocation9]  }
 0x285   : > { %s1738_s16 = sshll.u32 %s1886_s27, 4  ;;  %s1739_s16 = int_to_ptr.vmem [resolvable:$false] %s1738_s16 }
 0x286   : > { %s1740_s15 = scalar_lea.vmem %s1739_s16, 2048  ;;  %p1741_p3 = scmp.lt.s32.totalorder %s2222_s0, %s1739_s16 }
 0x287   : > { %p2351_p9 = scmp.ne.s32.totalorder %s2349_s9, 0  ;;  %p1742_p8 = scmp.lt.s32.totalorder %s1740_s15, %s1734_s17 }
 0x288   : > { %s2219_s20 = scalar_lea.hbm %s2350_s14, %s1344_s2 }
 0x289   : > { %p1736_p10 = pnand %p1735_p5, %p2351_p9  ;;  %p1743_p6 = por %p1742_p8, %p1741_p3 }
 0x28b   : > { %p1737_p13 = pneg %p1736_p10 }
 0x28d   : > { %p1744_p12 = pnand %p1743_p6, %p1737_p13 }
 0x28f   : > { %1747 = shalt.err (!%p1744_p12)
}
 0x290   : > { %s1748_s23 = scalar_lea.hbm %s2219_s20, 1024  ;;  %s1752_s18 = scalar_lea.hbm %s2350_s14, 2048 }
 0x291   : > { %p1749_p7 = scmp.ne.s32.totalorder %s2219_s20, %s1748_s23  ;;  %p1753_p0 = scmp.lt.u32.totalorder %s2219_s20, %s2350_s14 }
 0x292   : > { %p1754_p1 = scmp.lt.u32.totalorder %s1752_s18, %s1748_s23  ;;  %p1756_p5 = scmp.lt.u32.totalorder %s1748_s23, %s2219_s20 }
 0x293   : > { %p1750_p2 = pnand %p1749_p7, %p2351_p9 }
 0x294   : > { %p1755_p4 = por %p1754_p1, %p1753_p0 }
 0x295   : > { %p1751_p11 = pneg %p1750_p2 }
 0x296   : > { %p1757_p10 = por %p1756_p5, %p1755_p4 }
 0x298   : > { %p1758_p13 = pnand %p1757_p10, %p1751_p11 }
 0x29a   : > { %1761 = shalt.err (!%p1758_p13)
}
 0x29b   : > { %s1887_s21 = smov 64   ;;  %s1888_s26 = smov 4  }
 0x29c   : > { %1526 = dma.vmem_to_hbm [thread:$0]  (%p2351_p9), %s2222_s0, 1024, %s2219_s20, %s2226_s6, %s1887_s21, %s1887_s21, %s1888_s26  }
 0x29d PF: > { %s2352_s11 = sld [smem:[#allocation13_spill]]  ;;  %s2353_s2 = sld [smem:[#allocation21_spill]] }
 0x29e   : > { %p1538_p3 = scmp.ge.s32.totalorder %s1876_s30, 2 }
 0x2a3   : > { %s1148_s12 = sand.u32 1, %s2352_s11   ;;  %p2354_p8 = scmp.ne.s32.totalorder %s2353_s2, 0 }
 0x2a4   : > { %s1149_s10 = scalar_lea.sflag [#allocation5], %s1148_s12 }
 0x2a5   : > { %p1533_p6 = pnand %p1538_p3, %p2354_p8 }
 0x2a7   : > { %1823 = dma.done.wait (!%p1533_p6), %s1149_s10, 1024  }
 0x2a8   : > { %1825 = vsyncadd (!%p1533_p6), %s1149_s10, 4294966272  ;;  %s22_s30 = sadd.s32 1, %s1876_s30   ;;  %s2356_s9 = sld [smem:[#allocation14_spill]] }
 0x2a9   : > { %p2255_p12 = scmp.ge.s32.totalorder %s22_s30, 6   ;;  %s2357_s20 = sld [smem:[#allocation19_spill]] }
 0x2aa   : > { %s2358_s0 = sld [smem:[#allocation18_spill]]  ;;  %s2359_s6 = sld [smem:[#allocation17_spill]] }
 0x2ab   : > { %s2360_s16 = sld [smem:[#allocation15_spill]]  ;;  %s2361_s15 = sld [smem:[#allocation16_spill]] }
 0x2ac   : > { %s2362_s18 = smov %s1832_s19  ;;  %s2364_s21 = smov %s1844_s22 }
 0x2ad   : > { %s2366_s23 = smov %s1852_s24  ;;  %s2367_s24 = smov %s1856_s25 }
 0x2ae   : > { %s2363_s19 = smov %s2356_s9  ;;  %s2369_s26 = smov %s1868_s28 }
 0x2af   : > { %s2370_s27 = smov %s1872_s29  ;;  %21 = sbr.rel (!%p2255_p12) target bundleno = 15 (0xf), region = 149 }
 0x2b0   : > { %s2365_s22 = smov %s2358_s0  ;;  %s2368_s25 = smov %s2359_s6 }
 0x2b1   : > { %s2371_s28 = smov %s2360_s16  ;;  %s2372_s29 = smov %s2361_s15 }
 0x2b6   :  { %1154 = vsyncpa [#allocation4], 1 }
 0x2b7   :  { %1156 = vsyncpa [#allocation4 + $0x1], 1 }
 0x2b8   :  { %1157 = vsyncpa [#allocation7], 1 }
 0x2b9   :  { %1158 = vsyncpa [#allocation5], 1 }
 0x2ba   :  { %1160 = vsyncpa [#allocation5 + $0x1], 1 }

</bundles_post_ra>
